<compile_context>
chip_gen: v5e
topology: v5e:2x2
jax: 0.10.0
libtpu: 0.0.40
codegen_flags: <defaults>
</compile_context>

<pallas_src>
import math

import jax
import jax.numpy as jnp
from jax.experimental import pallas as pl
from jax.experimental.pallas import tpu as pltpu

# --- config: matches the grokking-example defaults ---
N_CTX = 3
D_MODEL = 128

# ~2 MiB per block: >=1-2 MiB per step (amortizes step overhead against HBM),
# <=4 MiB so x/out double-buffers + resident W_pos fit v7x's scoped VMEM.
_TARGET_BLOCK_BYTES = 2 * 1024 * 1024


def _pos_embed_kernel(x_ref, wpos_ref, o_ref):
    # Element-wise VPU add on (8,128)-aligned, lane-dense tiles.  wpos_ref
    # already holds the row-periodic positional rows for this tile, so there
    # is no per-step broadcast.  astype handles bf16 x + f32 W_pos promotion.
    o_ref[...] = (x_ref[...] + wpos_ref[...]).astype(o_ref.dtype)


def pos_embed(x, W_pos, *, target_block_bytes=_TARGET_BLOCK_BYTES):
    """PosEmbed.forward: x + W_pos[: x.shape[-2]] for x of shape (..., seq, d)."""
    *lead, p, d = x.shape
    wpos = W_pos[:p]  # static slice, same semantics as W_pos[:x.shape[-2]]
    out_dtype = jnp.result_type(x.dtype, W_pos.dtype)

    total_rows = p * math.prod(lead) if lead else p
    x2 = x.reshape(total_rows, d)  # flatten batch*seq onto the sublane axis

    # Row tile must be a multiple of lcm(p, 8): multiple of 8 for sublane
    # alignment, multiple of p so every tile starts at position 0 of the
    # positional table (one pre-tiled W_pos block serves every grid step).
    base = (p * 8) // math.gcd(p, 8)
    row_bytes = d * jnp.dtype(x.dtype).itemsize
    if total_rows <= base or total_rows * row_bytes <= target_block_bytes:
        # Single block covering the whole (small) array: always a legal block
        # shape because it equals the full array dims.
        row_tile = total_rows
    else:
        row_tile = max(base, (target_block_bytes // row_bytes) // base * base)
        row_tile = min(row_tile, (total_rows // base) * base)

    # Positional rows for one tile, built once in the wrapper (tiny, static).
    wpos_tile = jnp.tile(wpos, (row_tile // p, 1))

    num_blocks = pl.cdiv(total_rows, row_tile)
    out2 = pl.pallas_call(
        _pos_embed_kernel,
        out_shape=jax.ShapeDtypeStruct((total_rows, d), out_dtype),
        grid=(num_blocks,),
        in_specs=[
            # one row-tile of activations per grid step
            pl.BlockSpec((row_tile, d), lambda i: (i, 0)),
            # positional block: same block every step -> VMEM-resident, DMA'd once
            pl.BlockSpec((row_tile, d), lambda i: (0, 0)),
        ],
        out_specs=pl.BlockSpec((row_tile, d), lambda i: (i, 0)),
        compiler_params=pltpu.CompilerParams(
            dimension_semantics=("parallel",),
        ),
    )(x2, wpos_tile)
    return out2.reshape(x.shape)


if __name__ == "__main__":
    key = jax.random.PRNGKey(0)
    k_pos, k1, k2, k3, k4 = jax.random.split(key, 5)

    # Parameter init mirrors the nn.Module: randn(n_ctx, d_model)/sqrt(d_model).
    W_pos = jax.random.normal(k_pos, (N_CTX, D_MODEL), jnp.float32) / jnp.sqrt(
        D_MODEL
    )

    # 1) literal grokking config: batch=2, seq=n_ctx=3, d=128 (single-block path)
    x = jax.random.normal(k1, (2, N_CTX, D_MODEL), jnp.float32)
    y = jax.block_until_ready(pos_embed(x, W_pos))
    assert y.shape == x.shape and y.dtype == jnp.float32
    assert bool(jnp.allclose(y, x + W_pos[:N_CTX], atol=1e-6, rtol=1e-6))

    # 2) the `[:x.shape[-2]]` slicing path with seq < n_ctx
    x2 = jax.random.normal(k2, (2, 2, D_MODEL), jnp.float32)
    y2 = jax.block_until_ready(pos_embed(x2, W_pos))
    assert bool(jnp.allclose(y2, x2 + W_pos[:2], atol=1e-6, rtol=1e-6))

    # 3) multi-block tiled path with a partial last tile: a small target block
    #    size forces row_tile=24 -> grid=9 over 70*3=210 rows (last tile 18/24
    #    rows valid), exercising the (8,128)-aligned tiling + edge masking.
    x3 = jax.random.normal(k3, (70, N_CTX, D_MODEL), jnp.float32)
    y3 = jax.block_until_ready(
        pos_embed(x3, W_pos, target_block_bytes=16 * 1024)
    )
    assert bool(jnp.allclose(y3, x3 + W_pos[:N_CTX], atol=1e-6, rtol=1e-6))

    # 4) mixed-dtype robustness: bf16 activations + f32 table -> f32 output.
    x4 = jax.random.normal(k4, (4, N_CTX, D_MODEL), jnp.float32).astype(
        jnp.bfloat16
    )
    y4 = jax.block_until_ready(pos_embed(x4, W_pos))
    assert y4.dtype == jnp.float32
    assert bool(
        jnp.allclose(
            y4, x4.astype(jnp.float32) + W_pos[:N_CTX], atol=1e-5, rtol=1e-5
        )
    )

    print("KERNEL_OK")
</pallas_src>

<mosaic_0001>
module attributes {stable_mosaic.version = 11 : i64} {
  func.func @_pos_embed_kernel(%arg0: i32, %arg1: memref<6x128xf32, #tpu.memory_space<vmem>>, %arg2: memref<6x128xf32, #tpu.memory_space<vmem>>, %arg3: memref<6x128xf32, #tpu.memory_space<vmem>>) attributes {dimension_semantics = [#tpu.dimension_semantics<parallel>], iteration_bounds = array<i64: 1>, scalar_prefetch = 0 : i64, scratch_operands = 0 : i64, tpu.core_type = #tpu.core_type<tc>, window_params = [{transform_indices = @transform_0, window_bounds = array<i64: 6, 128>}, {pipeline_mode = #tpu.pipeline_mode<synchronous>, transform_indices = @transform_1, window_bounds = array<i64: 6, 128>}, {transform_indices = @transform_2, window_bounds = array<i64: 6, 128>}]} {
    %c0 = arith.constant 0 : index
    %c0_0 = arith.constant 0 : index
    %0 = vector.load %arg1[%c0, %c0_0] : memref<6x128xf32, #tpu.memory_space<vmem>>, vector<6x128xf32>
    %c0_1 = arith.constant 0 : index
    %c0_2 = arith.constant 0 : index
    %1 = vector.load %arg2[%c0_1, %c0_2] : memref<6x128xf32, #tpu.memory_space<vmem>>, vector<6x128xf32>
    %2 = arith.addf %0, %1 : vector<6x128xf32>
    %c0_3 = arith.constant 0 : index
    %c0_4 = arith.constant 0 : index
    %3 = vector.load %arg3[%c0_3, %c0_4] : memref<6x128xf32, #tpu.memory_space<vmem>>, vector<6x128xf32>
    tpu.vector_store %arg3[%c0_3, %c0_4], %2 {strides = array<i32>} : memref<6x128xf32, #tpu.memory_space<vmem>>, vector<6x128xf32>,
    return
  }
  func.func @transform_0(%arg0: i32) -> (i32, i32) {
    %c0_i32 = arith.constant 0 : i32
    %c0_i32_0 = arith.constant 0 : i32
    return %arg0, %c0_i32 : i32, i32
  }
  func.func @transform_1(%arg0: i32) -> (i32, i32) {
    %c0_i32 = arith.constant 0 : i32
    %c0_i32_0 = arith.constant 0 : i32
    %c0_i32_1 = arith.constant 0 : i32
    return %c0_i32, %c0_i32_0 : i32, i32
  }
  func.func @transform_2(%arg0: i32) -> (i32, i32) {
    %c0_i32 = arith.constant 0 : i32
    %c0_i32_0 = arith.constant 0 : i32
    return %arg0, %c0_i32 : i32, i32
  }
}

</mosaic_0001>

<bundles_post_ra>
// kernel: tpu_custom_call.1
= control target key start
LH: loop header
LB: loop body
LE: loop exit
PB: predicated region body
PF: predicated region fallthrough
CT: control target
= control target key end

     0   :  { %7 = vsyncpa [#allocation3], 0  ;;  %s170_s0 = inlined_call_operand.hbm [shape: f32[6,128], index: 0, kind: input, shape index: {}]   ;;  %s171_s1 = inlined_call_operand.hbm [shape: f32[6,128], index: 1, kind: input, shape index: {}]   ;;  %s172_s2 = inlined_call_operand.hbm [shape: f32[6,128], index: 2, kind: output, shape index: {}]  }
   0x1   :  { %8 = vsyncpa [#allocation6], 0 }
   0x2   :  { %9 = vsyncpa [#allocation4], 0  ;;  %s15_s11 = sshll.u32 %s170_s0, 4  ;;  %s143_s12 = smov [#allocation2]   ;;  %s16_s11 = int_to_ptr.hbm [resolvable:$true] %s15_s11 }
   0x3   :  { %s17_s13 = sshll.u32 %s143_s12, 4  ;;  %s26_s16 = sshll.u32 %s171_s1, 4  ;;  %s18_s13 = int_to_ptr.vmem [resolvable:$true] %s17_s13  ;;  %s27_s16 = int_to_ptr.hbm [resolvable:$true] %s26_s16 }
   0x4   :  { %20 = dma.hbm_to_vmem [thread:$0]  %s16_s11, 128, %s18_s13, [#allocation3]  }
   0x5   :  { %s144_s17 = smov [#allocation5]  }
   0x6   :  { %s28_s18 = sshll.u32 %s144_s17, 4  ;;  %s29_s18 = int_to_ptr.vmem [resolvable:$true] %s28_s18 }
   0x7   :  { %31 = dma.hbm_to_vmem [thread:$0]  %s27_s16, 128, %s29_s18, [#allocation6]  }
   0x8   :  { %137 = dma.done.wait [#allocation3], 128  }
   0x9   :  { %138 = vsyncadd [#allocation3], 4294967168 }
   0xa   :  { %139 = dma.done.wait [#allocation6], 128  }
   0xb   :  { %140 = vsyncadd [#allocation6], 4294967168  ;;  %s145_s19 = smov [#allocation7]   ;;  %s51_s22 = sshll.u32 %s172_s2, 4  ;;  %v40_v0 = vld [vmem:[#allocation2] sm:$0x3f]  ;;  %s52_s22 = int_to_ptr.hbm [resolvable:$true] %s51_s22 }
   0xc   :  { %s49_s0 = sshll.u32 %s145_s19, 4  ;;  %v41_v1 = vld [vmem:[#allocation5] sm:$0x3f]  ;;  %s50_s0 = int_to_ptr.vmem [resolvable:$true] %s49_s0 }
   0xd   :  { %v42_v2 = vadd.f32 %v41_v1, %v40_v0 }
   0xf   :  { %43 = vst [vmem:[#allocation7] sm:$0x3f] %v42_v2 }
  0x10   :  { %54 = dma.vmem_to_hbm [thread:$0]  %s50_s0, 128, %s52_s22, [#allocation4]  }
  0x11   :  { %141 = dma.done.wait [#allocation4], 128  }
  0x12   :  { %142 = vsyncadd [#allocation4], 4294967168 }
  0x13   :  { %59 = vsyncpa [#allocation3], 1 }
  0x14   :  { %60 = vsyncpa [#allocation6], 1 }
  0x15   :  { %61 = vsyncpa [#allocation4], 1 }

</bundles_post_ra>
